<compile_context>
chip_gen: v5e
topology: v5e:2x2
jax: 0.10.0
libtpu: 0.0.40
codegen_flags: <defaults>
</compile_context>

<pallas_src>
import math
import functools

import jax
import jax.numpy as jnp
from jax import lax
from jax.experimental import pallas as pl
from jax.experimental.pallas import tpu as pltpu


def _round_up(x, m):
    return ((x + m - 1) // m) * m


# ---------------------------------------------------------------------------
# Kernels
# ---------------------------------------------------------------------------

def _niaf_kernel_concat(x_ref, wmu_ref, wvar_ref, z_ref, bmu_ref, bstd_ref,
                        eps_ref, o_ref, *, kh, kw, img_w, tile_m):
    """Small-Cin path: windowed load, square once, in-register im2col, 2 matmuls.

    x_ref:   (Cin_p, L)        zero-padded, width-W flattened image (one batch elem)
    wmu_ref: (Cout_p, K_p)     bf16 flattened mean weights (tap-major, channel-minor)
    wvar_ref:(Cout_p, K_p)     bf16 flattened variance weights
    z_ref:   (Cout_p, 1)       multiplicative noise z for this batch element
    bmu_ref: (Cout_p, 1)       bias mean
    bstd_ref:(Cout_p, 1)       bias std (added to variance, matching PyTorch code)
    eps_ref: (Cout_p, tile_m)  output-space gaussian noise tile
    o_ref:   (Cout_p, tile_m)  transposed, lane-dense output tile
    """
    halo = (kh - 1) * img_w + (kw - 1)
    base = pl.multiple_of(pl.program_id(1) * tile_m, 128)
    win = x_ref[:, pl.ds(base, tile_m + halo)]            # (Cin_p, tile_m+halo) f32
    win_sq = win * win                                    # square ONCE per tile

    cols, cols_sq = [], []
    for ki in range(kh):
        for kj in range(kw):
            off = ki * img_w + kj
            cols.append(win[:, off:off + tile_m])         # (Cin_p, tile_m), static slice
            cols_sq.append(win_sq[:, off:off + tile_m])
    # f32 concat (every piece sublane-aligned: Cin_p % 8 == 0); single bf16 cast
    # of each (K_p, tile_m) slab feeds a single-pass bf16 MXU matmul.
    x_cat = jnp.concatenate(cols, axis=0).astype(jnp.bfloat16)
    xsq_cat = jnp.concatenate(cols_sq, axis=0).astype(jnp.bfloat16)

    out_mu = jnp.dot(wmu_ref[...], x_cat, preferred_element_type=jnp.float32)
    out_var = jnp.dot(wvar_ref[...], xsq_cat, preferred_element_type=jnp.float32)

    out_mu = out_mu * z_ref[...] + bmu_ref[...]
    out_var = jnp.maximum(out_var + bstd_ref[...], 0.0)   # clamp before sqrt
    o_ref[...] = out_mu + jnp.sqrt(out_var) * eps_ref[...]


def _niaf_kernel_per_tap(x_ref, wmu_ref, wvar_ref, z_ref, bmu_ref, bstd_ref,
                         eps_ref, o_ref, *, kh, kw, img_w, tile_m):
    """Large-Cin path: per-tap MXU accumulation, no in-VMEM im2col.

    wmu_ref / wvar_ref: (KH*KW, Cout_p, Cin_p) bf16 per-tap weights.
    """
    base = pl.multiple_of(pl.program_id(1) * tile_m, 128)
    cout_p = o_ref.shape[0]
    acc_mu = jnp.zeros((cout_p, tile_m), jnp.float32)
    acc_var = jnp.zeros((cout_p, tile_m), jnp.float32)
    for ki in range(kh):
        for kj in range(kw):
            t = ki * kw + kj
            off = ki * img_w + kj
            slab = x_ref[:, pl.ds(base + off, tile_m)]     # (Cin_p, tile_m) f32
            slab_b = slab.astype(jnp.bfloat16)
            slab_sq_b = (slab * slab).astype(jnp.bfloat16)  # square in f32, then cast
            acc_mu += jnp.dot(wmu_ref[t], slab_b,
                              preferred_element_type=jnp.float32)
            acc_var += jnp.dot(wvar_ref[t], slab_sq_b,
                               preferred_element_type=jnp.float32)
    out_mu = acc_mu * z_ref[...] + bmu_ref[...]
    out_var = jnp.maximum(acc_var + bstd_ref[...], 0.0)
    o_ref[...] = out_mu + jnp.sqrt(out_var) * eps_ref[...]


# ---------------------------------------------------------------------------
# Wrapper
# ---------------------------------------------------------------------------

def niaf_conv2d_forward(x_nchw, params, epsilon_z, epsilon_linear,
                        threshold_var=0.5, tile_m=1024,
                        vmem_limit_bytes=64 * 1024 * 1024,
                        force_per_tap=False):
    """Training-mode forward of NIAFConv2D (batch_size > 1, same_noise=False).

    tile_m: output-tile lane width (multiple of 128, clamped to the output
    size).  Sweep 512-2048 on v5e/v6e (128 MiB VMEM); drop to ~256 and keep
    vmem_limit_bytes <= 48 MiB on v7x (64 MiB VMEM).
    """
    weight_mu = params["weight_mu"]            # (Cout, Cin, KH, KW)
    weight_logstd = params["weight_logstd"]
    bias_mu = params["bias_mu"]                # (Cout,)
    bias_logvar = params["bias_logvar"]
    qzero_mu = params["qzero_mu"]
    qzero_logvar = params["qzero_logvar"]

    n, cin, h, w = x_nchw.shape
    cout, _, kh, kw = weight_mu.shape
    oh, ow = h - kh + 1, w - kw + 1

    # ---- parameter preprocessing (tiny, stays in XLA) ----------------------
    weight_var = jnp.square(jnp.clip(jnp.exp(weight_logstd), 0.0, threshold_var))
    bias_std = jnp.clip(jnp.exp(0.5 * bias_logvar), 0.0, threshold_var)
    # z = qzero_mu + exp(0.5*qzero_logvar) * eps_z   (flow_q: see TODO above)
    z = qzero_mu[None, :] + jnp.exp(0.5 * qzero_logvar)[None, :] * epsilon_z

    # ---- alignment padding --------------------------------------------------
    cin_p = _round_up(cin, 8)                  # sublane-aligned input channels
    cout_p = _round_up(cout, 8)                # sublane-aligned output channels
    k_p = kh * kw * cin_p

    use_per_tap = force_per_tap or cin_p >= 128

    def _flat_w(w4):       # (Cout,Cin,KH,KW) -> (Cout_p, K_p) bf16 (ki,kj,c minor)
        w4 = jnp.pad(w4, ((0, cout_p - cout), (0, cin_p - cin), (0, 0), (0, 0)))
        return jnp.transpose(w4, (0, 2, 3, 1)).reshape(cout_p, k_p).astype(jnp.bfloat16)

    def _tap_w(w4):        # (Cout,Cin,KH,KW) -> (KH*KW, Cout_p, Cin_p) bf16
        w4 = jnp.pad(w4, ((0, cout_p - cout), (0, cin_p - cin), (0, 0), (0, 0)))
        return jnp.transpose(w4, (2, 3, 0, 1)).reshape(kh * kw, cout_p, cin_p).astype(jnp.bfloat16)

    if use_per_tap:
        wmu_in, wvar_in = _tap_w(weight_mu), _tap_w(weight_var)
        w_spec = pl.BlockSpec((kh * kw, cout_p, cin_p), lambda b, mt: (0, 0, 0))
    else:
        wmu_in, wvar_in = _flat_w(weight_mu), _flat_w(weight_var)
        w_spec = pl.BlockSpec((cout_p, k_p), lambda b, mt: (0, 0))

    # ---- flattened output space (width W; KW-1 junk columns per row) -------
    m_out = oh * w
    tile_m = _round_up(max(128, min(tile_m, _round_up(m_out, 128))), 128)
    num_mt = pl.cdiv(m_out, tile_m)
    m_pad = num_mt * tile_m
    halo = (kh - 1) * w + (kw - 1)
    l_pad = _round_up(m_pad + halo, 128)

    x_flat = jnp.pad(x_nchw.reshape(n, cin, h * w),
                     ((0, 0), (0, cin_p - cin), (0, l_pad - h * w)))
    eps_flat = jnp.pad(epsilon_linear, ((0, 0), (0, 0), (0, 0), (0, w - ow)))
    eps_flat = jnp.pad(eps_flat.reshape(n, cout, m_out),
                       ((0, 0), (0, cout_p - cout), (0, m_pad - m_out)))

    z_p = jnp.pad(z, ((0, 0), (0, cout_p - cout)))[:, :, None]       # (N,Cout_p,1)
    bmu_p = jnp.pad(bias_mu, ((0, cout_p - cout),))[:, None]          # (Cout_p,1)
    bstd_p = jnp.pad(bias_std, ((0, cout_p - cout),))[:, None]        # (Cout_p,1)

    kernel = functools.partial(
        _niaf_kernel_per_tap if use_per_tap else _niaf_kernel_concat,
        kh=kh, kw=kw, img_w=w, tile_m=tile_m)

    out_flat = pl.pallas_call(
        kernel,
        out_shape=jax.ShapeDtypeStruct((n, cout_p, m_pad), jnp.float32),
        grid=(n, num_mt),
        in_specs=[
            pl.BlockSpec((None, cin_p, l_pad), lambda b, mt: (b, 0, 0)),   # x resident per b
            w_spec,                                                        # mean weights
            w_spec,                                                        # var weights
            pl.BlockSpec((None, cout_p, 1), lambda b, mt: (b, 0, 0)),      # z
            pl.BlockSpec((cout_p, 1), lambda b, mt: (0, 0)),               # bias_mu
            pl.BlockSpec((cout_p, 1), lambda b, mt: (0, 0)),               # bias_std
            pl.BlockSpec((None, cout_p, tile_m), lambda b, mt: (b, 0, mt)),  # eps tile
        ],
        out_specs=pl.BlockSpec((None, cout_p, tile_m), lambda b, mt: (b, 0, mt)),
        compiler_params=pltpu.CompilerParams(
            # batch axis parallel (megacore split lands on distinct images),
            # M-tile axis arbitrary (resident x slab not duplicated per core).
            dimension_semantics=("parallel", "arbitrary"),
            vmem_limit_bytes=vmem_limit_bytes),
    )(x_flat, wmu_in, wvar_in, z_p, bmu_p, bstd_p, eps_flat)

    # (N, Cout_p, M_pad) -> NCHW: drop channel padding, padded tail, junk cols.
    out = out_flat[:, :cout, :m_out].reshape(n, cout, oh, w)[:, :, :, :ow]
    return out


# ---------------------------------------------------------------------------
# Pure-JAX reference (matches the PyTorch training forward)
# ---------------------------------------------------------------------------

def _reference_forward(x_nchw, params, epsilon_z, epsilon_linear,
                       threshold_var=0.5):
    weight_mu = params["weight_mu"]
    weight_std = jnp.clip(jnp.exp(params["weight_logstd"]), 0.0, threshold_var)
    bias_std = jnp.clip(jnp.exp(0.5 * params["bias_logvar"]), 0.0, threshold_var)
    qzero_std = jnp.exp(0.5 * params["qzero_logvar"])
    z = params["qzero_mu"][None, :] + qzero_std[None, :] * epsilon_z

    dn = ("NCHW", "OIHW", "NCHW")
    out_mu = lax.conv_general_dilated(
        x_nchw, weight_mu, (1, 1), "VALID", dimension_numbers=dn,
        precision=jax.lax.Precision.HIGHEST)
    out_mu = out_mu * z[:, :, None, None] + params["bias_mu"][None, :, None, None]
    # NOTE: matches the PyTorch code, which adds bias_std (a std, not a var)
    # to the variance term via F.conv2d(..., bias=bias_std).
    out_var = lax.conv_general_dilated(
        x_nchw * x_nchw, weight_std * weight_std, (1, 1), "VALID",
        dimension_numbers=dn, precision=jax.lax.Precision.HIGHEST)
    out_var = out_var + bias_std[None, :, None, None]
    return out_mu + jnp.sqrt(out_var) * epsilon_linear


if __name__ == "__main__":
    # Module hyper-params (small, consistent with the PyTorch __init__).
    nb_filter, stack_size, nb_row, nb_col = 8, 4, 3, 3
    batch, H, W = 2, 16, 16
    threshold_var = 0.5

    OH, OW = H - nb_row + 1, W - nb_col + 1

    key = jax.random.PRNGKey(0)
    ks = jax.random.split(key, 8)

    in_stdv = math.sqrt(4.0 / nb_filter)
    out_size = nb_row * nb_col * stack_size
    out_stdv = math.sqrt(4.0 / out_size)
    stdv2 = math.sqrt(4.0 / (nb_filter + out_size))

    params = {
        "weight_mu": stdv2 * jax.random.normal(
            ks[0], (nb_filter, stack_size, nb_row, nb_col), jnp.float32),
        "weight_logstd": -9.0 + 0.001 * stdv2 * jax.random.normal(
            ks[1], (nb_filter, stack_size, nb_row, nb_col), jnp.float32),
        "bias_mu": jnp.zeros((nb_filter,), jnp.float32),
        "bias_logvar": -9.0 + 0.001 * out_stdv * jax.random.normal(
            ks[2], (nb_filter,), jnp.float32),
        "qzero_mu": in_stdv * jax.random.normal(ks[3], (nb_filter,), jnp.float32),
        "qzero_logvar": math.log(0.1) + 0.001 * in_stdv * jax.random.normal(
            ks[4], (nb_filter,), jnp.float32),
    }

    x = jax.random.normal(ks[5], (batch, stack_size, H, W), jnp.float32)
    epsilon_z = jax.random.normal(ks[6], (batch, nb_filter), jnp.float32)
    epsilon_linear = jax.random.normal(
        ks[7], (batch, nb_filter, OH, OW), jnp.float32)

    ref = _reference_forward(x, params, epsilon_z, epsilon_linear,
                             threshold_var)
    ref = jax.block_until_ready(ref)

    def _check(out):
        assert out.shape == (batch, nb_filter, OH, OW)
        err = jnp.abs(out - ref)
        # Kernel uses single-pass bf16 MXU (per perf review); reference uses
        # f32 HIGHEST.  Worst-case |err| ~ 2^-8 * sum|x*w| * |z| ~ 0.08 at
        # this contraction length, typical error far smaller.
        max_err = float(jnp.max(err))
        mean_err = float(jnp.mean(err))
        assert max_err < 1e-1, max_err
        assert mean_err < 1e-2, mean_err

    # Small-Cin (im2col-concat) path; tile_m=128 exercises the (batch, mt) grid.
    out = niaf_conv2d_forward(x, params, epsilon_z, epsilon_linear,
                              threshold_var, tile_m=128)
    out = jax.block_until_ready(out)
    _check(out)

    # Large-Cin (per-tap MXU accumulation) path, forced at toy size to verify it.
    out_tap = niaf_conv2d_forward(x, params, epsilon_z, epsilon_linear,
                                  threshold_var, tile_m=128, force_per_tap=True)
    out_tap = jax.block_until_ready(out_tap)
    _check(out_tap)

    print("KERNEL_OK")
</pallas_src>

<mosaic_0001>
module attributes {stable_mosaic.version = 11 : i64} {
  func.func @_niaf_kernel_concat(%arg0: i32, %arg1: i32, %arg2: memref<1x8x384xf32, #tpu.memory_space<vmem>>, %arg3: memref<8x72xbf16, #tpu.memory_space<vmem>>, %arg4: memref<8x72xbf16, #tpu.memory_space<vmem>>, %arg5: memref<1x8x1xf32, #tpu.memory_space<vmem>>, %arg6: memref<8x1xf32, #tpu.memory_space<vmem>>, %arg7: memref<8x1xf32, #tpu.memory_space<vmem>>, %arg8: memref<1x8x128xf32, #tpu.memory_space<vmem>>, %arg9: memref<1x8x128xf32, #tpu.memory_space<vmem>>) attributes {dimension_semantics = [#tpu.dimension_semantics<parallel>, #tpu.dimension_semantics<arbitrary>], iteration_bounds = array<i64: 2, 2>, scalar_prefetch = 0 : i64, scratch_operands = 0 : i64, tpu.core_type = #tpu.core_type<tc>, window_params = [{transform_indices = @transform_0, window_bounds = array<i64: 1, 8, 384>}, {pipeline_mode = #tpu.pipeline_mode<synchronous>, transform_indices = @transform_1, window_bounds = array<i64: 8, 72>}, {pipeline_mode = #tpu.pipeline_mode<synchronous>, transform_indices = @transform_2, window_bounds = array<i64: 8, 72>}, {transform_indices = @transform_3, window_bounds = array<i64: 1, 8, 1>}, {pipeline_mode = #tpu.pipeline_mode<synchronous>, transform_indices = @transform_4, window_bounds = array<i64: 8, 1>}, {pipeline_mode = #tpu.pipeline_mode<synchronous>, transform_indices = @transform_5, window_bounds = array<i64: 8, 1>}, {transform_indices = @transform_6, window_bounds = array<i64: 1, 8, 128>}, {transform_indices = @transform_7, window_bounds = array<i64: 1, 8, 128>}]} {
    %c128_i32 = arith.constant 128 : i32
    %0 = arith.muli %arg1, %c128_i32 : i32
    %1 = tpu.assume_multiple %0, 128 : i32
    %c0 = arith.constant 0 : index
    %c0_0 = arith.constant 0 : index
    %2 = arith.index_cast %1 : i32 to index
    %3 = vector.load %arg2[%c0, %c0_0, %2] : memref<1x8x384xf32, #tpu.memory_space<vmem>>, vector<1x8x162xf32>
    %4 = vector.shape_cast %3 : vector<1x8x162xf32> to vector<8x162xf32>
    %5 = arith.mulf %4, %4 : vector<8x162xf32>
    %6 = vector.extract_strided_slice %4 {offsets = [0, 0], sizes = [8, 128], strides = [1, 1]} : vector<8x162xf32> to vector<8x128xf32>
    %7 = vector.extract_strided_slice %5 {offsets = [0, 0], sizes = [8, 128], strides = [1, 1]} : vector<8x162xf32> to vector<8x128xf32>
    %8 = vector.extract_strided_slice %4 {offsets = [0, 1], sizes = [8, 128], strides = [1, 1]} : vector<8x162xf32> to vector<8x128xf32>
    %9 = vector.extract_strided_slice %5 {offsets = [0, 1], sizes = [8, 128], strides = [1, 1]} : vector<8x162xf32> to vector<8x128xf32>
    %10 = vector.extract_strided_slice %4 {offsets = [0, 2], sizes = [8, 128], strides = [1, 1]} : vector<8x162xf32> to vector<8x128xf32>
    %11 = vector.extract_strided_slice %5 {offsets = [0, 2], sizes = [8, 128], strides = [1, 1]} : vector<8x162xf32> to vector<8x128xf32>
    %12 = vector.extract_strided_slice %4 {offsets = [0, 16], sizes = [8, 128], strides = [1, 1]} : vector<8x162xf32> to vector<8x128xf32>
    %13 = vector.extract_strided_slice %5 {offsets = [0, 16], sizes = [8, 128], strides = [1, 1]} : vector<8x162xf32> to vector<8x128xf32>
    %14 = vector.extract_strided_slice %4 {offsets = [0, 17], sizes = [8, 128], strides = [1, 1]} : vector<8x162xf32> to vector<8x128xf32>
    %15 = vector.extract_strided_slice %5 {offsets = [0, 17], sizes = [8, 128], strides = [1, 1]} : vector<8x162xf32> to vector<8x128xf32>
    %16 = vector.extract_strided_slice %4 {offsets = [0, 18], sizes = [8, 128], strides = [1, 1]} : vector<8x162xf32> to vector<8x128xf32>
    %17 = vector.extract_strided_slice %5 {offsets = [0, 18], sizes = [8, 128], strides = [1, 1]} : vector<8x162xf32> to vector<8x128xf32>
    %18 = vector.extract_strided_slice %4 {offsets = [0, 32], sizes = [8, 128], strides = [1, 1]} : vector<8x162xf32> to vector<8x128xf32>
    %19 = vector.extract_strided_slice %5 {offsets = [0, 32], sizes = [8, 128], strides = [1, 1]} : vector<8x162xf32> to vector<8x128xf32>
    %20 = vector.extract_strided_slice %4 {offsets = [0, 33], sizes = [8, 128], strides = [1, 1]} : vector<8x162xf32> to vector<8x128xf32>
    %21 = vector.extract_strided_slice %5 {offsets = [0, 33], sizes = [8, 128], strides = [1, 1]} : vector<8x162xf32> to vector<8x128xf32>
    %22 = vector.extract_strided_slice %4 {offsets = [0, 34], sizes = [8, 128], strides = [1, 1]} : vector<8x162xf32> to vector<8x128xf32>
    %23 = vector.extract_strided_slice %5 {offsets = [0, 34], sizes = [8, 128], strides = [1, 1]} : vector<8x162xf32> to vector<8x128xf32>
    %24 = tpu.concatenate %6, %8, %10, %12, %14, %16, %18, %20, %22 in 0 : vector<8x128xf32>, vector<8x128xf32>, vector<8x128xf32>, vector<8x128xf32>, vector<8x128xf32>, vector<8x128xf32>, vector<8x128xf32>, vector<8x128xf32>, vector<8x128xf32> -> vector<72x128xf32>
    %25 = arith.truncf %24 : vector<72x128xf32> to vector<72x128xbf16>
    %26 = tpu.concatenate %7, %9, %11, %13, %15, %17, %19, %21, %23 in 0 : vector<8x128xf32>, vector<8x128xf32>, vector<8x128xf32>, vector<8x128xf32>, vector<8x128xf32>, vector<8x128xf32>, vector<8x128xf32>, vector<8x128xf32>, vector<8x128xf32> -> vector<72x128xf32>
    %27 = arith.truncf %26 : vector<72x128xf32> to vector<72x128xbf16>
    %c0_1 = arith.constant 0 : index
    %c0_2 = arith.constant 0 : index
    %28 = vector.load %arg3[%c0_1, %c0_2] : memref<8x72xbf16, #tpu.memory_space<vmem>>, vector<8x72xbf16>
    %cst = arith.constant dense<0.000000e+00> : vector<8x128xf32>
    %29 = tpu.matmul %28, %25, %cst {dimension_numbers = #tpu.dot_dimension_numbers<[1], [0], [0], [1], [0, 0, 1, 1], [], []>} : vector<8x72xbf16>, vector<72x128xbf16>, vector<8x128xf32> -> vector<8x128xf32>
    %c0_3 = arith.constant 0 : index
    %c0_4 = arith.constant 0 : index
    %30 = vector.load %arg4[%c0_3, %c0_4] : memref<8x72xbf16, #tpu.memory_space<vmem>>, vector<8x72xbf16>
    %cst_5 = arith.constant dense<0.000000e+00> : vector<8x128xf32>
    %31 = tpu.matmul %30, %27, %cst_5 {dimension_numbers = #tpu.dot_dimension_numbers<[1], [0], [0], [1], [0, 0, 1, 1], [], []>} : vector<8x72xbf16>, vector<72x128xbf16>, vector<8x128xf32> -> vector<8x128xf32>
    %c0_6 = arith.constant 0 : index
    %c0_7 = arith.constant 0 : index
    %c0_8 = arith.constant 0 : index
    %32 = vector.load %arg5[%c0_6, %c0_7, %c0_8] : memref<1x8x1xf32, #tpu.memory_space<vmem>>, vector<1x8x1xf32>
    %33 = vector.shape_cast %32 : vector<1x8x1xf32> to vector<8x1xf32>
    %34 = vector.broadcast %33 : vector<8x1xf32> to vector<8x128xf32>
    %35 = arith.mulf %29, %34 : vector<8x128xf32>
    %c0_9 = arith.constant 0 : index
    %c0_10 = arith.constant 0 : index
    %36 = vector.load %arg6[%c0_9, %c0_10] : memref<8x1xf32, #tpu.memory_space<vmem>>, vector<8x1xf32>
    %37 = vector.broadcast %36 : vector<8x1xf32> to vector<8x128xf32>
    %38 = arith.addf %35, %37 : vector<8x128xf32>
    %c0_11 = arith.constant 0 : index
    %c0_12 = arith.constant 0 : index
    %39 = vector.load %arg7[%c0_11, %c0_12] : memref<8x1xf32, #tpu.memory_space<vmem>>, vector<8x1xf32>
    %40 = vector.broadcast %39 : vector<8x1xf32> to vector<8x128xf32>
    %41 = arith.addf %31, %40 : vector<8x128xf32>
    %cst_13 = arith.constant 0.000000e+00 : f32
    %42 = vector.broadcast %cst_13 : f32 to vector<8x128xf32>
    %43 = arith.maximumf %41, %42 : vector<8x128xf32>
    %44 = math.sqrt %43 : vector<8x128xf32>
    %c0_14 = arith.constant 0 : index
    %c0_15 = arith.constant 0 : index
    %c0_16 = arith.constant 0 : index
    %45 = vector.load %arg8[%c0_14, %c0_15, %c0_16] : memref<1x8x128xf32, #tpu.memory_space<vmem>>, vector<1x8x128xf32>
    %46 = vector.shape_cast %45 : vector<1x8x128xf32> to vector<8x128xf32>
    %47 = arith.mulf %44, %46 : vector<8x128xf32>
    %48 = arith.addf %38, %47 : vector<8x128xf32>
    %c0_17 = arith.constant 0 : index
    %c0_18 = arith.constant 0 : index
    %c0_19 = arith.constant 0 : index
    %49 = vector.load %arg9[%c0_17, %c0_18, %c0_19] : memref<1x8x128xf32, #tpu.memory_space<vmem>>, vector<1x8x128xf32>
    %50 = vector.shape_cast %49 : vector<1x8x128xf32> to vector<8x128xf32>
    %51 = vector.shape_cast %48 : vector<8x128xf32> to vector<1x8x128xf32>
    tpu.vector_store %arg9[%c0_17, %c0_18, %c0_19], %51 {strides = array<i32>} : memref<1x8x128xf32, #tpu.memory_space<vmem>>, vector<1x8x128xf32>,
    return
  }
  func.func @transform_0(%arg0: i32, %arg1: i32) -> (i32, i32, i32) {
    %c0_i32 = arith.constant 0 : i32
    %c0_i32_0 = arith.constant 0 : i32
    %c0_i32_1 = arith.constant 0 : i32
    return %arg0, %c0_i32, %c0_i32_0 : i32, i32, i32
  }
  func.func @transform_1(%arg0: i32, %arg1: i32) -> (i32, i32) {
    %c0_i32 = arith.constant 0 : i32
    %c0_i32_0 = arith.constant 0 : i32
    %c0_i32_1 = arith.constant 0 : i32
    return %c0_i32, %c0_i32_0 : i32, i32
  }
  func.func @transform_2(%arg0: i32, %arg1: i32) -> (i32, i32) {
    %c0_i32 = arith.constant 0 : i32
    %c0_i32_0 = arith.constant 0 : i32
    %c0_i32_1 = arith.constant 0 : i32
    return %c0_i32, %c0_i32_0 : i32, i32
  }
  func.func @transform_3(%arg0: i32, %arg1: i32) -> (i32, i32, i32) {
    %c0_i32 = arith.constant 0 : i32
    %c0_i32_0 = arith.constant 0 : i32
    %c0_i32_1 = arith.constant 0 : i32
    return %arg0, %c0_i32, %c0_i32_0 : i32, i32, i32
  }
  func.func @transform_4(%arg0: i32, %arg1: i32) -> (i32, i32) {
    %c0_i32 = arith.constant 0 : i32
    %c0_i32_0 = arith.constant 0 : i32
    %c0_i32_1 = arith.constant 0 : i32
    return %c0_i32, %c0_i32_0 : i32, i32
  }
  func.func @transform_5(%arg0: i32, %arg1: i32) -> (i32, i32) {
    %c0_i32 = arith.constant 0 : i32
    %c0_i32_0 = arith.constant 0 : i32
    %c0_i32_1 = arith.constant 0 : i32
    return %c0_i32, %c0_i32_0 : i32, i32
  }
  func.func @transform_6(%arg0: i32, %arg1: i32) -> (i32, i32, i32) {
    %c0_i32 = arith.constant 0 : i32
    %c0_i32_0 = arith.constant 0 : i32
    return %arg0, %c0_i32, %arg1 : i32, i32, i32
  }
  func.func @transform_7(%arg0: i32, %arg1: i32) -> (i32, i32, i32) {
    %c0_i32 = arith.constant 0 : i32
    %c0_i32_0 = arith.constant 0 : i32
    return %arg0, %c0_i32, %arg1 : i32, i32, i32
  }
}

</mosaic_0001>

<bundles_post_ra>
// kernel: tpu_custom_call.1
= control target key start
LH: loop header
LB: loop body
LE: loop exit
PB: predicated region body
PF: predicated region fallthrough
CT: control target
= control target key end

     0   :  { %s1444_s0 = inlined_call_operand.hbm [shape: f32[2,8,384], index: 0, kind: input, shape index: {}]   ;;  %s1445_s1 = inlined_call_operand.vmem [shape: bf16[8,72], index: 1, kind: input, shape index: {}]   ;;  %s1446_s2 = inlined_call_operand.vmem [shape: bf16[8,72], index: 2, kind: input, shape index: {}]   ;;  %s1447_s3 = inlined_call_operand.vmem [shape: f32[2,8,1], index: 3, kind: input, shape index: {}]   ;;  %s1448_s4 = inlined_call_operand.vmem [shape: f32[8,1], index: 4, kind: input, shape index: {}]   ;;  %s1449_s5 = inlined_call_operand.vmem [shape: f32[8,1], index: 5, kind: input, shape index: {}]   ;;  %s1450_s6 = inlined_call_operand.hbm [shape: f32[2,8,256], index: 6, kind: input, shape index: {}]   ;;  %s1451_s7 = inlined_call_operand.hbm [shape: f32[2,8,256], index: 7, kind: output, shape index: {}]  }
   0x1   :  { %1460 = sst [smem:[#allocation17_spill]] %s1444_s0 }
   0x2   :  { %1461 = sst [smem:[#allocation18_spill]] %s1445_s1 }
   0x3   :  { %1462 = sst [smem:[#allocation19_spill]] %s1446_s2 }
   0x4   :  { %1463 = sst [smem:[#allocation20_spill]] %s1447_s3 }
   0x5   :  { %1464 = sst [smem:[#allocation21_spill]] %s1448_s4 }
   0x6   :  { %1465 = sst [smem:[#allocation22_spill]] %s1449_s5 }
   0x7   :  { %1466 = sst [smem:[#allocation23_spill]] %s1451_s7 }
   0x8   :  { %12 = vsyncpa [#allocation3], 0 }
   0x9   :  { %14 = vsyncpa [#allocation3 + $0x1], 0 }
   0xa   :  { %15 = vsyncpa [#allocation6], 0 }
   0xb   :  { %17 = vsyncpa [#allocation6 + $0x1], 0 }
   0xc   :  { %18 = vsyncpa [#allocation4], 0 }
   0xd   :  { %20 = vsyncpa [#allocation4 + $0x1], 0  ;;  %s1180_s24 = smov 0   ;;  %s1182_s25 = smov 0  }
   0xe   :  { %s1184_s26 = smov 0   ;;  %s1186_s27 = smov 0  }
   0xf   :  { %s1188_s28 = smov 0   ;;  %s1190_s29 = smov 0  }
  0x10   :  { %s1192_s30 = smov 0   ;;  %s1194_s8 = smov 0  }
  0x11   :  { %s1196_s9 = smov 0   ;;  %s1198_s10 = smov 0  }
  0x12   :  { %s1200_s11 = smov 0  }
  0x13 LB: > { %1467 = sst [smem:[#allocation11_spill]] %s1089_s24  ;;  %s718_s12 = sadd.s32 4294967295, %s1129_s11   ;;  %s1129_s11 = sphi %s1200_s11, %s26_s11   ;;  %s1125_s10 = sphi %s1198_s10, %s1504_s10   ;;  %s1121_s9 = sphi %s1196_s9, %s1503_s9   ;;  %s1117_s8 = sphi %s1194_s8, %s1502_s8   ;;  %s1113_s30 = sphi %s1192_s30, %s1501_s30   ;;  %s1109_s29 = sphi %s1190_s29, %s1500_s29   ;;  %s1105_s28 = sphi %s1188_s28, %s1499_s28   ;;  %s1101_s27 = sphi %s1186_s27, %s1498_s27   ;;  %s1097_s26 = sphi %s1184_s26, %s1497_s26   ;;  %s1093_s25 = sphi %s1182_s25, %s1496_s25   ;;  %s1089_s24 = sphi %s1180_s24, %s1495_s24  }
  0x14   : > { %1468 = sst [smem:[#allocation12_spill]] %s1117_s8  ;;  %p52_p0 = scmp.ne.s32.totalorder %s1109_s29, %s1105_s28 }
  0x15   : > { %p53_p1 = scmp.eq.s32.totalorder %s1129_s11, 0  ;;  %p58_p2 = scmp.ne.s32.totalorder %s1105_s28, %s1101_s27 }
  0x16   : > { %p1241_p3 = scmp.eq.s32.totalorder %s718_s12, 0  ;;  %p759_p6 = scmp.lt.s32.totalorder %s1129_s11, 4 }
  0x17   : > { %p54_p4 = por %p53_p1, %p52_p0  ;;  %s260_s16 = sand.u32 1, %s1109_s29  }
  0x18   : > { %p1249_p5 = por %p1241_p3, %p58_p2  ;;  %s740_s17 = smul.u32 24, %s1125_s10 }
  0x19   : > { %s739_s18 = smul.u32 24, %s260_s16  ;;  %s1471_s0 = sld [smem:[#allocation17_spill]] }
  0x1a   : > { %p749_p7 = pnand %p759_p6, %p54_p4  ;;  %s261_s13 = scalar_lea.sflag [#allocation3], %s260_s16 }
  0x1b   : > { %s264_s23 = scalar_lea.vmem [#allocation2], %s739_s18  ;;  %p726_p8 = scmp.ge.s32.totalorder %s1129_s11, 1 }
  0x1c   : > { %s273_s27 = sshll.u32 %s264_s23, 4  ;;  %p306_p9 = scmp.lt.s32.totalorder %s1129_s11, 5  ;;  %s274_s27 = int_to_ptr.vmem [resolvable:$true] %s273_s27 }
  0x1d   : > { %s719_s19 = sadd.s32 4294967294, %s1129_s11   ;;  %s35_s20 = sadd.s32 1, %s1121_s9 }
  0x1e   : > { %p1263_p10 = pnand %p726_p8, %p306_p9  ;;  %p36_p11 = scmp.ge.s32.totalorder %s35_s20, 2 }
  0x1f   : > { %s269_s21 = scalar_lea.hbm %s1471_s0, %s740_s17  ;;  %s183_s18 = sadd.s32 1, %s1097_s26 }
  0x20   : > { %s271_s22 = sshll.u32 %s269_s21, 4  ;;  %s38_s21 = sadd.s32 1, %s1125_s10  ;;  %s272_s22 = int_to_ptr.hbm [resolvable:$true] %s271_s22 }
  0x21   : > { %751 = dma.hbm_to_vmem [thread:$0]  (!%p749_p7), %s272_s22, 384, %s274_s27, %s261_s13  }
  0x22   : > { %p190_p12 = scmp.ne.s32.totalorder %s1097_s26, %s1093_s25  ;;  %p196_p13 = scmp.ne.s32.totalorder %s1093_s25, %s1089_s24 }
  0x23   : > { %s1506_s20 = smov (%p36_p11, %s35_s20), 0  ;;  %s1508_s21 = smov (!%p36_p11, %s38_s21), %s1125_s10 }
  0x24   : > { %1473 = sst [smem:[#allocation13_spill]] %s1506_s20  ;;  %s179_s13 = ssub.s32 %s1121_s9, %s1506_s20 }
  0x25   : > { %p1282_p0 = por %p190_p12, %p53_p1  ;;  %p40_p2 = scmp.ge.s32.totalorder %s1508_s21, 2 }
  0x26   : > { %p1288_p4 = por %p196_p13, %p1241_p3  ;;  %p222_p7 = scmp.eq.s32.totalorder %s718_s12, 3 }
  0x27   : > { %p228_p8 = scmp.eq.s32.totalorder %s719_s19, 3  ;;  %s1510_s21 = smov (%p40_p2, %s1508_s21), 0 }
  0x28   : > { %1476 = sst [smem:[#allocation14_spill]] %s1510_s21  ;;  %p1296_p9 = por %p222_p7, %p190_p12 }
  0x29   : > { %p1300_p1 = por %p228_p8, %p196_p13  ;;  %s42_s14 = ssub.s32 %s1125_s10, %s1510_s21 }
  0x2a   : > { %s1477_s23 = scalar_select %p1296_p9, 1, 0 }
  0x2b   : > { %s1479_s27 = scalar_select %p1300_p1, 1, 0 }
  0x2c   : > { %1478 = sst [smem:[#allocation15_spill]] %s1477_s23  ;;  %s287_s0 = sand.u32 1, %s1097_s26  }
  0x2d   : > { %1480 = sst [smem:[#allocation16_spill]] %s1479_s27  ;;  %p43_p3 = scmp.eq.s32.totalorder %s42_s14, 0 }
  0x2e   : > { %s180_s20 = sor.u32 %s179_s13, %s42_s14  ;;  %s1481_s12 = sadd.s32 1, %s1109_s29 }
  0x2f   : > { %p181_p11 = scmp.eq.s32.totalorder %s180_s20, 0  ;;  %s723_s7 = sshll.u32 %s287_s0, 3 }
  0x30   : > { %s1310_s19 = scalar_select %p43_p3, %s1109_s29, %s1481_s12  }
  0x31   : > { %s1313_s24 = scalar_select %p181_p11, %s1097_s26, %s183_s18  }
  0x32   : > { %s724_s1 = sshll.u32 %s1125_s10, 1  ;;  %s291_s4 = scalar_lea.vmem [#allocation5], %s723_s7 }
  0x33   : > { %s295_s2 = sadd.s32 %s1121_s9, %s724_s1  ;;  %s301_s3 = sshll.u32 %s291_s4, 4  ;;  %s302_s3 = int_to_ptr.vmem [resolvable:$true] %s301_s3 }
  0x34   : > { %s725_s23 = sshll.u32 %s295_s2, 3  ;;  %p752_p12 = pnand %p759_p6, %p1282_p0 }
  0x35   : > { %s297_s21 = scalar_lea.hbm %s1450_s6, %s725_s23  ;;  %s288_s20 = scalar_lea.sflag [#allocation6], %s287_s0 }
  0x36   : > { %s299_s8 = sshll.u32 %s297_s21, 4  ;;  %310 = sbr.rel (%p1263_p10) target bundleno = 375 (0x177), region = 48  ;;  %s300_s8 = int_to_ptr.hbm [resolvable:$true] %s299_s8 }
  0x37   : > { %754 = dma.hbm_to_vmem [thread:$0]  (!%p752_p12), %s300_s8, 128, %s302_s3, %s288_s20  }
  0x38   : > { %s312_s1 = sand.u32 (!%p1263_p10), 1, %s1105_s28  }
  0x39   : > { %s741_s2 = smul.u32 (!%p1263_p10), 24, %s312_s1  ;;  %s313_s4 = scalar_lea.sflag (!%p1263_p10), [#allocation3], %s312_s1 }
  0x3b   : > { %s316_s7 = scalar_lea.vmem [#allocation2], %s741_s2 }
  0x3c   : > { %1076 = dma.done.wait (%p1249_p5), %s313_s4, 384  }
  0x3d   : > { %1078 = vsyncadd (%p1249_p5), %s313_s4, 4294966912  ;;  %s1332_s5 = sand.u32 1, %s1093_s25  }
  0x3e   : > { %s727_s0 = sshll.u32 %s1332_s5, 3  ;;  %s323_s3 = scalar_lea.sflag [#allocation6], %s1332_s5 }
  0x3f   : > { %s1338_s8 = scalar_lea.vmem [#allocation5], %s727_s0 }
  0x40   : > { %1080 = dma.done.wait (%p1288_p4), %s323_s3, 128  }
  0x41   : > { %1082 = vsyncadd (%p1288_p4), %s323_s3, 4294967168  ;;  %s730_s15 = sshll.u32 %s1113_s30, 7  ;;  %s1131_s13 = smov 95   ;;  %vm436_vm0 = vcmask 769024   ;;  %vm504_vm1 = vcmask 1043456   ;;  %v1139_v24 = vmov 0  }
  0x42   : > { %s373_s17 = sshra.s32 %s730_s15, 7  ;;  %s1132_s16 = smov 94   ;;  %938 = vset.pattern.permute.xlu1 %v1139_v24  ;;  %vm422_vm2 = vcmask 785408   ;;  %vm429_vm3 = vcmask 777216   ;;  %940 = vset.pattern.permute.xlu0 %v1139_v24  ;;  %vm408_vm4 = vcmask 908288   ;;  %vm415_vm5 = vcmask 900096  }
  0x43   : > { %s731_s21 = sshll.u32 %s373_s17, 3  ;;  %s1133_s22 = smov 110   ;;  %939 = vset.pattern.permute.xlu2 %v1139_v24  ;;  %vm394_vm6 = vcmask 1031168   ;;  %vm401_vm7 = vcmask 916480   ;;  %vm387_vm8 = vcmask 1039360   ;;  %vm500_vm9 = vcmask 588800  }
  0x44   : > { %s376_s18 = scalar_lea.vmem %s316_s7, %s731_s21 [#allocation2]  ;;  %s1134_s23 = smov 111  }
  0x45   : > { %v1345_v0 = vld [vmem:[%s376_s18] sm:$0xff]  ;;  %v378_v1 = vld [vmem:[%s376_s18 + $0x8] sm:$0xff]  ;;  %s1135_s27 = smov 96   ;;  %s1136_s14 = smov 126  }
  0x46   : > { %v1349_v2 = vmul.f32 %v1345_v0, %v1345_v0  ;;  %v380_v3 = vmul.f32 %v378_v1, %v378_v1  ;;  %v898_v5 = vpack.i.bf16 %v378_v1, %v1345_v0  ;;  %s1137_s12 = smov 112   ;;  %s1138_s20 = smov 127  }
  0x47   : > { %s1482_s1 = sld [smem:[#allocation12_spill]] }
  0x48   : > { %v868_v4 = vpack.i.bf16 %v380_v3, %v1349_v2  ;;  %s1483_s7 = sld [smem:[#allocation22_spill]] }
  0x49   : > { %s1484_s18 = sld [smem:[#allocation20_spill]] }
  0x4a   : > { %869 = vrot.lane.b32.xlu1 %v868_v4, %s1131_s13  ;;  %859 = vrot.lane.b32.xlu0 %v868_v4, %s1132_s16  ;;  %s1487_s4 = sld [smem:[#allocation18_spill]] }
  0x4b   : > { %879 = vrot.lane.b32.xlu2 %v868_v4, %s1133_s22 }
  0x4d   : > { %p367_p5 = scmp.lt.s32.totalorder %s1482_s1, 1 }
  0x4e   : > { %v536_v21 = vld [vmem:[%s1483_s7] sm:$0xff]  ;;  %s735_s7 = sshll.u32 %s1482_s1, 1 }
  0x4f   : > { %s368_s3 = scalar_select %p367_p5, %s1482_s1, 1 }
  0x50   : > { %v499_v24 = vld [vmem:[%s1487_s4] sm:$0xf]  ;;  %s366_s1 = scalar_lea.vmem [#allocation7], %s727_s0 }
  0x51   : > { %s729_s15 = sshll.u32 %s368_s3, 3  ;;  %s589_s3 = sadd.s32 %s1113_s30, %s735_s7 }
  0x52   : > { %874 = vrot.lane.b32.xlu1 %v868_v4, %s1134_s23  ;;  %864 = vrot.lane.b32.xlu0 %v868_v4, %s1135_s27 }
  0x53   : > { %884 = vrot.lane.b32.xlu2 %v868_v4, %s1136_s14 }
  0x5a   : > { %889 = vrot.lane.b32.xlu0 %v868_v4, %s1137_s12  ;;  %894 = vrot.lane.b32.xlu1 %v868_v4, %s1138_s20 }
  0x5b   : > { %899 = vrot.lane.b32.xlu2 %v898_v5, %s1132_s16  ;;  %s593_s16 = sshll.u32 %s366_s1, 4  ;;  %s594_s16 = int_to_ptr.vmem [resolvable:$true] %s593_s16 }
  0x62   : > { %904 = vrot.lane.b32.xlu0 %v898_v5, %s1135_s27  ;;  %909 = vrot.lane.b32.xlu1 %v898_v5, %s1131_s13  ;;  %s370_s13 = scalar_lea.vmem %s1484_s18, %s729_s15  ;;  %s736_s15 = sshll.u32 %s589_s3, 3 }
  0x63   : > { %914 = vrot.lane.b32.xlu2 %v898_v5, %s1134_s23  ;;  %s1485_s23 = sld [smem:[#allocation21_spill]]  ;;  %v522_v49 = vld [vmem:[%s370_s13] sm:$0xff] }
  0x64   : > { %s1488_s18 = sld [smem:[#allocation23_spill]] }
  0x69   : > { %v529_v48 = vld [vmem:[%s1485_s23] sm:$0xff]  ;;  %s579_s23 = scalar_lea.sflag [#allocation4], %s1332_s5 }
  0x6a   : > { %919 = vrot.lane.b32.xlu0 %v898_v5, %s1133_s22  ;;  %924 = vrot.lane.b32.xlu1 %v898_v5, %s1136_s14  ;;  %s591_s13 = scalar_lea.hbm %s1488_s18, %s736_s15  ;;  %s1023_s0 = scalar_lea.hbm %s1488_s18, 32 }
  0x6b   : > { %929 = vrot.lane.b32.xlu2 %v898_v5, %s1137_s12  ;;  %s1486_s12 = sld [smem:[#allocation19_spill]]  ;;  %s595_s22 = sshll.u32 %s591_s13, 4  ;;  %s596_s22 = int_to_ptr.hbm [resolvable:$true] %s595_s22 }
  0x71   : > { %v521_v61 = vld [vmem:[%s1486_s12] sm:$0xf] }
  0x72   : > { %934 = vrot.lane.b32.xlu0 %v898_v5, %s1138_s20  ;;  %539 = vperm.xlu1 %938, %v536_v21  }
  0x73   : > { %525 = vperm.xlu2 %939, %v522_v49  }
  0x7a   : > { %532 = vperm.xlu0 %940, %v529_v48  }
  0xa5   : > { %v880_v6 = vpop.permute.xlu2 %879 }
  0xa6   : > { %v882_v25 = vunpack.i.h.bf16 %v880_v6  ;;  %v881_v26 = vunpack.i.l.bf16 %v880_v6 }
  0xa8   : > { %v474_v39 = vsel %vm415_vm5, %v881_v26, %v882_v25 }
  0xad   : > { %v885_v7 = vpop.permute.xlu2 %884 }
  0xae   : > { %v887_v35 = vunpack.i.h.bf16 %v885_v7  ;;  %v886_v36 = vunpack.i.l.bf16 %v885_v7 }
  0xb0   : > { %v456_v43 = vsel %vm394_vm6, %v886_v36, %v887_v35 }
  0xb5   : > { %v900_v8 = vpop.permute.xlu2 %899 }
  0xb6   : > { %v902_v9 = vunpack.i.h.bf16 %v900_v8  ;;  %v901_v10 = vunpack.i.l.bf16 %v900_v8 }
  0xb8   : > { %v437_v11 = vsel %vm436_vm0, %v901_v10, %v902_v9 }
  0xb9   : > { %v443_v12 = vpack.c.bf16 %v437_v11, %v437_v11 }
  0xbb   : > { %v506_v13 = vsel %vm504_vm1, %v443_v12, 0 }
  0xbc   : > { %v870_v14 = vpop.permute.xlu1 %869  ;;  %v860_v15 = vpop.permute.xlu0 %859  ;;  %511 = vmatpush.bf16.msra.mxu0 %v506_v13 }
  0xbd   : > { %v862_v16 = vunpack.i.h.bf16 %v860_v15  ;;  %v861_v17 = vunpack.i.l.bf16 %v860_v15  ;;  %v872_v22 = vunpack.i.h.bf16 %v870_v14  ;;  %v871_v23 = vunpack.i.l.bf16 %v870_v14  ;;  %v915_v50 = vpop.permute.xlu2 %914 }
  0xbe   : > { %v917_v1 = vunpack.i.h.bf16 %v915_v50  ;;  %v916_v3 = vunpack.i.l.bf16 %v915_v50 }
  0xbf   : > { %v492_v18 = vsel %vm436_vm0, %v861_v17, %v862_v16  ;;  %v486_v34 = vsel %vm429_vm3, %v871_v23, %v872_v22 }
  0xc0   : > { %v498_v19 = vpack.c.bf16 %v492_v18, %v492_v18  ;;  %v409_v9 = vsel %vm408_vm4, %v916_v3, %v917_v1 }
  0xc2   : > { %v546_v20 = vsel %vm504_vm1, %v498_v19, 0 }
  0xc3   : > { %551 = vmatpush.bf16.msra.mxu1 %v546_v20 }
  0xc4   : > { %v875_v27 = vpop.permute.xlu1 %874  ;;  %v865_v28 = vpop.permute.xlu0 %864 }
  0xc5   : > { %v877_v29 = vunpack.i.h.bf16 %v875_v27  ;;  %v876_v30 = vunpack.i.l.bf16 %v875_v27  ;;  %v867_v31 = vunpack.i.h.bf16 %v865_v28  ;;  %v866_v32 = vunpack.i.l.bf16 %v865_v28 }
  0xc7   : > { %v480_v33 = vsel %vm422_vm2, %v866_v32, %v867_v31  ;;  %v468_v38 = vsel %vm408_vm4, %v876_v30, %v877_v29 }
  0xc8   : > { %v497_v37 = vpack.c.bf16 %v486_v34, %v480_v33  ;;  %v496_v41 = vpack.c.bf16 %v474_v39, %v468_v38 }
  0xca   : > { %552 = vmatpush.bf16.msra.mxu1 %v497_v37 }
  0xcc   : > { %v890_v40 = vpop.permute.xlu0 %889  ;;  %v895_v42 = vpop.permute.xlu1 %894 }
  0xcd   : > { %v892_v44 = vunpack.i.h.bf16 %v890_v40  ;;  %v891_v45 = vunpack.i.l.bf16 %v890_v40  ;;  %v897_v46 = vunpack.i.h.bf16 %v895_v42  ;;  %v896_v47 = vunpack.i.l.bf16 %v895_v42  ;;  %v574_v40 = vld [vmem:[%s1338_s8] sm:$0xff]  ;;  %s1017_s8 = sshra.s32 %s596_s22, 4  ;;  %s1018_s8 = int_to_ptr.hbm [resolvable:$true] %s1017_s8 }
  0xce   : > { %553 = vmatpush.bf16.msra.mxu1 %v496_v41  ;;  %s1019_s27 = scalar_lea.hbm %s1018_s8, 8  ;;  %p1024_p0 = scmp.lt.s32.totalorder %s1018_s8, %s1488_s18 }
  0xcf   : > { %v462_v51 = vsel %vm401_vm7, %v891_v45, %v892_v44  ;;  %v450_v52 = vsel %vm387_vm8, %v896_v47, %v897_v46  ;;  %p1020_p6 = scmp.ne.s32.totalorder %s1018_s8, %s1019_s27  ;;  %p1025_p2 = scmp.lt.s32.totalorder %s1023_s0, %s1019_s27 }
  0xd0   : > { %v495_v53 = vpack.c.bf16 %v462_v51, %v456_v43  ;;  %v494_v54 = vpack.c.bf16 %v450_v52, %v1349_v2  ;;  %v930_v2 = vpop.permute.xlu2 %929 }
  0xd1   : > { %v932_v5 = vunpack.i.h.bf16 %v930_v2  ;;  %v931_v6 = vunpack.i.l.bf16 %v930_v2  ;;  %p1021_p10 = pnand %p1020_p6, %p1296_p9  ;;  %p1026_p4 = por %p1025_p2, %p1024_p0 }
  0xd2   : > { %554 = vmatpush.bf16.msra.mxu1 %v495_v53 }
  0xd3   : > { %v402_v16 = vsel %vm401_vm7, %v931_v6, %v932_v5  ;;  %p1022_p13 = pneg %p1021_p10 }
  0xd4   : > { %v905_v55 = vpop.permute.xlu0 %904  ;;  %v910_v56 = vpop.permute.xlu1 %909 }
  0xd5   : > { %v907_v57 = vunpack.i.h.bf16 %v905_v55  ;;  %v906_v58 = vunpack.i.l.bf16 %v905_v55  ;;  %v912_v59 = vunpack.i.h.bf16 %v910_v56  ;;  %v911_v60 = vunpack.i.l.bf16 %v910_v56  ;;  %p1027_p7 = pnand %p1026_p4, %p1022_p13 }
  0xd6   : > { %555 = vmatpush.bf16.msra.mxu1 %v494_v54 }
  0xd7   : > { %v423_v62 = vsel %vm422_vm2, %v906_v58, %v907_v57  ;;  %v430_v63 = vsel %vm429_vm3, %v911_v60, %v912_v59 }
  0xd8   : > { %v442_v4 = vpack.c.bf16 %v430_v63, %v423_v62 }
  0xd9   : > { %733 = vmatmul.msk.bf16.vlgmr.msra.gmra.mxu1 %vm500_vm9, %v521_v61 }
  0xda   : > { %512 = vmatpush.bf16.msra.mxu0 %v442_v4 }
  0xdc   : > { %v920_v7 = vpop.permute.xlu0 %919  ;;  %v925_v8 = vpop.permute.xlu1 %924 }
  0xdd   : > { %v922_v10 = vunpack.i.h.bf16 %v920_v7  ;;  %v921_v11 = vunpack.i.l.bf16 %v920_v7  ;;  %v927_v12 = vunpack.i.h.bf16 %v925_v8  ;;  %v926_v13 = vunpack.i.l.bf16 %v925_v8 }
  0xdf   : > { %v416_v14 = vsel %vm415_vm5, %v921_v11, %v922_v10  ;;  %v395_v15 = vsel %vm394_vm6, %v926_v13, %v927_v12 }
  0xe0   : > { %v441_v17 = vpack.c.bf16 %v416_v14, %v409_v9  ;;  %v440_v18 = vpack.c.bf16 %v402_v16, %v395_v15 }
  0xe2   : > { %513 = vmatpush.bf16.msra.mxu0 %v441_v17 }
  0xe4   : > { %v935_v19 = vpop.permute.xlu0 %934  ;;  %v540_v25 = vpop.permute.xlu1 %539 }
  0xe5   : > { %v937_v20 = vunpack.i.h.bf16 %v935_v19  ;;  %v936_v21 = vunpack.i.l.bf16 %v935_v19 }
  0xe6   : > { %514 = vmatpush.bf16.msra.mxu0 %v440_v18 }
  0xe7   : > { %v388_v22 = vsel %vm387_vm8, %v936_v21, %v937_v20 }
  0xe8   : > { %v439_v23 = vpack.c.bf16 %v388_v22, %v1345_v0  ;;  %v526_v0 = vpop.permute.xlu2 %525 }
  0xea   : > { %515 = vmatpush.bf16.msra.mxu0 %v439_v23 }
  0xec   : > { %v533_v38 = vpop.permute.xlu0 %532 }
  0xed   : > { %732 = vmatmul.msk.bf16.vlgmr.msra.gmra.mxu0 %vm500_vm9, %v499_v24 }
 0x156   : > { %v557_v26 = vpop.f32.mrf.mxu1 }
 0x157   : > { %v558_v27 = vadd.f32 %v557_v26, %v540_v25 }
 0x159   : > { %v561_v28 = vmax.f32 %v558_v27, 0.0 }
 0x15b   : > { %941 = vrsqrt.f32 %v561_v28  ;;  %vm569_vm10 = vcmp.eq.f32.partialorder %v561_v28, inf  ;;  %v572_v41 = vand.u32 2147483648, %v561_v28  ;;  %vm571_vm11 = vcmp.eq.f32.partialorder %v561_v28, 0.0 }
 0x15e   : > { %v559_v29 = vpop.f32.mrf.mxu1 }
 0x161   : > { %v942_v30 = vpop.eup %941 }
 0x162   : > { %v563_v31 = vmul.f32 %v942_v30, %v561_v28 }
 0x164   : > { %v564_v32 = vmul.f32 %v942_v30, %v563_v31 }
 0x166   : > { %v565_v33 = vmul.f32 0.5, %v564_v32 }
 0x168   : > { %v566_v34 = vsub.f32 1.5, %v565_v33 }
 0x16a   : > { %v517_v35 = vpop.f32.mrf.mxu0  ;;  %v567_v36 = vmul.f32 %v942_v30, %v566_v34 }
 0x16b   : > { %v528_v37 = vmul.f32 %v526_v0, %v517_v35 }
 0x16c   : > { %v568_v39 = vmul.f32 %v567_v36, %v561_v28 }
 0x16d   : > { %v535_v42 = vadd.f32 %v533_v38, %v528_v37 }
 0x16e   : > { %v570_v43 = vsel %vm569_vm10, %v561_v28, %v568_v39 }
 0x16f   : > { %v573_v44 = vsel %vm571_vm11, %v572_v41, %v570_v43 }
 0x170   : > { %v575_v45 = vmul.f32 %v574_v40, %v573_v44 }
 0x172   : > { %v576_v46 = vadd.f32 %v575_v45, %v535_v42  ;;  %v519_v47 = vpop.f32.mrf.mxu0 }
 0x174   : > { %577 = vst [vmem:[%s366_s1] sm:$0xff] %v576_v46 }
 0x175   : > { %1030 = shalt.err (!%p1027_p7)
}
 0x176   : > { %746 = dma.vmem_to_hbm [thread:$0]  (%p1296_p9), %s594_s16, 128, %s596_s22, %s579_s23  }
 0x177 PF: > { %s1490_s5 = sld [smem:[#allocation11_spill]]  ;;  %p760_p8 = scmp.ge.s32.totalorder %s1129_s11, 2 }
 0x179   : > { %p756_p3 = pnand %p760_p8, %p1300_p1 }
 0x17b   : > { %p757_p11 = pneg %p756_p3 }
 0x17d   : > { %s607_s7 = sand.u32 1, %s1490_s5  }
 0x17e   : > { %s608_s3 = scalar_lea.sflag [#allocation4], %s607_s7 }
 0x17f   : > { %1084 = dma.done.wait (%p757_p11), %s608_s3, 128  }
 0x180   : > { %1086 = vsyncadd (%p757_p11), %s608_s3, 4294967168  ;;  %s26_s11 = sadd.s32 1, %s1129_s11   ;;  %s1492_s15 = smov %s1313_s24 }
 0x181   : > { %p23_p12 = scmp.ge.s32.totalorder %s26_s11, 6   ;;  %s1493_s17 = sld [smem:[#allocation13_spill]] }
 0x182   : > { %s1494_s21 = sld [smem:[#allocation14_spill]]  ;;  %s1495_s24 = smov %s1093_s25 }
 0x183   : > { %s1496_s25 = smov %s1097_s26  ;;  %s1497_s26 = smov %s1492_s15 }
 0x184   : > { %s1498_s27 = smov %s1105_s28  ;;  %s1499_s28 = smov %s1109_s29 }
 0x185   : > { %s1500_s29 = smov %s1310_s19  ;;  %s1501_s30 = smov %s1121_s9 }
 0x186   : > { %s1502_s8 = smov %s1125_s10  ;;  %25 = sbr.rel (!%p23_p12) target bundleno = 19 (0x13), region = 110 }
 0x187   : > { %s1503_s9 = smov %s1493_s17 }
 0x188   : > { %s1504_s10 = smov %s1494_s21 }
 0x18b   :  { %614 = vsyncpa [#allocation3], 1 }
 0x18c   :  { %616 = vsyncpa [#allocation3 + $0x1], 1 }
 0x18d   :  { %617 = vsyncpa [#allocation6], 1 }
 0x18e   :  { %619 = vsyncpa [#allocation6 + $0x1], 1 }
 0x18f   :  { %620 = vsyncpa [#allocation4], 1 }
 0x190   :  { %622 = vsyncpa [#allocation4 + $0x1], 1 }

</bundles_post_ra>
